<compile_context>
chip_gen: v6e
topology: v6e:2x2x1
jax: 0.10.0
libtpu: 0.0.40
codegen_flags: <defaults>
</compile_context>

<pallas_src>
import numpy as np
import jax
import jax.numpy as jnp
from jax.experimental import pallas as pl
from jax.experimental.pallas import tpu as pltpu

EPS = 1e-5
TILE_BYTES_TARGET = 6 << 20          # ~6 MiB per data tile (roofline knee ~4 MiB)


def _vmem_capacity_bytes():
    """Physical VMEM of the current chip, with a safe fallback."""
    try:
        return int(pltpu.get_tpu_info().vmem_capacity_bytes)
    except Exception:
        return 64 << 20              # conservative (v7x per-TC) if query fails


def _vmem_limit(footprint_bytes):
    """Explicit scoped-VMEM limit: footprint + slack, capped below physical."""
    cap = _vmem_capacity_bytes()
    return int(min(max(footprint_bytes + (4 << 20), 32 << 20), cap - (8 << 20)))


def _tile(total, align, target):
    """Largest multiple of `align` that divides `total`, capped at `target`.

    Falls back to the full extent (a full-dim block is always legal)."""
    if total <= target:
        return total
    t = (target // align) * align
    while t >= align:
        if total % t == 0:
            return t
        t -= align
    return total


def _row_align(dtype):
    """Sublane alignment for the row tile: 8 f32, 16 bf16, 32 int8/fp8."""
    return max(8, 32 // jnp.dtype(dtype).itemsize)


def _pick_tiles(rows, hw, dtype, tile_bytes_target):
    """(tr, thw) for a (rows, hw) array, ~tile_bytes_target bytes per tile."""
    itemsize = jnp.dtype(dtype).itemsize
    align = _row_align(dtype)
    # Lane tile first (lane-dense stores are the biggest measured lever),
    # then fill rows up to the byte budget.
    thw_cap = max(128, tile_bytes_target // (align * itemsize))
    thw = _tile(hw, 128, min(hw, thw_cap))
    rows_cap = max(align, tile_bytes_target // max(thw * itemsize, 1))
    tr = _tile(rows, align, min(rows, rows_cap))
    # Guard the full-extent fallback (awkward divisors) from blowing VMEM.
    # TODO(synk): for pathological shapes, pad once in the wrapper instead.
    if tr * thw * itemsize > 2 * tile_bytes_target and tr > align:
        tr = _tile(rows, align, align)
    return tr, thw


# ---------------------------------------------------------------------------
# Pass 1: per-row (sample, channel) sum / sum-of-squares over the minibatch
# ---------------------------------------------------------------------------
def _stats_kernel(mb_ref, acc_ref):
    # mb_ref:  (TR, THW) tile of the flattened (Nm*C, HW) minibatch
    # acc_ref: (TR, 2) resident accumulator: col 0 = sum, col 1 = sum of squares
    @pl.when(pl.program_id(1) == 0)
    def _():
        acc_ref[...] = jnp.zeros_like(acc_ref)

    mb = mb_ref[...].astype(jnp.float32)                    # (TR, THW)
    s = jnp.sum(mb, axis=1, keepdims=True)                  # (TR, 1)
    ss = jnp.sum(mb * mb, axis=1, keepdims=True)            # (TR, 1)
    acc_ref[...] += jnp.concatenate([s, ss], axis=1)        # one full-width RMW


def _channel_stats(minibatch):
    """Returns (sum_c, sumsq_c) over (N, H, W) for each channel, f32."""
    Nm, C, H, W = minibatch.shape
    HW = H * W
    Rm = Nm * C
    mb2 = minibatch.reshape(Rm, HW)         # free contiguous reshape (row = n*C + c)

    itemsize = jnp.dtype(minibatch.dtype).itemsize
    tr, thw = _pick_tiles(Rm, HW, minibatch.dtype, TILE_BYTES_TARGET)
    grid = (Rm // tr, HW // thw)

    footprint = 2 * tr * thw * itemsize + 2 * tr * 2 * 4    # dbl-buffered in + acc

    stats = pl.pallas_call(
        _stats_kernel,
        out_shape=jax.ShapeDtypeStruct((Rm, 2), jnp.float32),
        grid_spec=pltpu.PrefetchScalarGridSpec(
            num_scalar_prefetch=0,
            grid=grid,
            in_specs=[pl.BlockSpec((tr, thw), lambda r, h: (r, h))],
            out_specs=pl.BlockSpec((tr, 2), lambda r, h: (r, 0)),
        ),
        compiler_params=pltpu.CompilerParams(
            dimension_semantics=("parallel", "arbitrary"),   # megacore on rows
            vmem_limit_bytes=_vmem_limit(footprint)),
        cost_estimate=pl.CostEstimate(
            flops=3 * Rm * HW,
            transcendentals=0,
            bytes_accessed=Rm * HW * itemsize + Rm * 2 * 4),
    )(mb2)

    per_row = stats.reshape(Nm, C, 2)
    return jnp.sum(per_row[..., 0], axis=0), jnp.sum(per_row[..., 1], axis=0)


# ---------------------------------------------------------------------------
# Pass 2: out = D[c] * x, on the flattened (N*C, HW) view (lane-dense tiles)
# ---------------------------------------------------------------------------
def _scale_kernel(d_ref, x_ref, o_ref):
    # d_ref: (TR, 1) per-row scale (f32); x_ref / o_ref: (TR, THW)
    # Multiply in f32 (free under the HBM roofline), cast only the product.
    prod = x_ref[...].astype(jnp.float32) * d_ref[...]
    o_ref[...] = prod.astype(o_ref.dtype)


@jax.jit
def dual_batchnorm2d_forward(x, minibatch, weight):
    """x, minibatch: (N, C, H, W); weight: (C,). Returns D * x (NCHW)."""
    N, C, H, W = x.shape
    Nm = minibatch.shape[0]
    HW = H * W
    n = Nm * HW

    # --- stats pass (reads minibatch exactly once) ---
    s, ss = _channel_stats(minibatch)
    # torch.var default: unbiased (Bessel's correction), matching the module.
    # TODO(synk): single-pass sum/sumsq can cancel if |mean| >> std; a mean-
    # shifted two-pass formulation would cost a second minibatch read.
    var = (ss - s * (s / n)) / (n - 1)
    D = weight.astype(jnp.float32) / jnp.sqrt(var + EPS)

    # --- scale pass on the native layout ---
    R = N * C
    x2 = x.reshape(R, HW)                        # free contiguous reshape
    d_rows = jnp.tile(D, (N,)).reshape(R, 1)     # tiny f32 vector, D[row % C]

    itemsize = jnp.dtype(x.dtype).itemsize
    tr, thw = _pick_tiles(R, HW, x.dtype, TILE_BYTES_TARGET)
    grid = (R // tr, HW // thw)

    tile_bytes = tr * thw * itemsize
    footprint = 2 * (2 * tile_bytes) + 2 * tr * 4   # dbl-buffered x + out (+ d)

    out2 = pl.pallas_call(
        _scale_kernel,
        out_shape=jax.ShapeDtypeStruct((R, HW), x.dtype),
        grid_spec=pltpu.PrefetchScalarGridSpec(
            num_scalar_prefetch=0,
            grid=grid,
            in_specs=[
                pl.BlockSpec((tr, 1), lambda r, h: (r, 0)),     # per-row D
                pl.BlockSpec((tr, thw), lambda r, h: (r, h)),   # x tile
            ],
            out_specs=pl.BlockSpec((tr, thw), lambda r, h: (r, h)),
        ),
        compiler_params=pltpu.CompilerParams(
            dimension_semantics=("parallel", "parallel"),       # megacore on v7x
            vmem_limit_bytes=_vmem_limit(footprint)),
        cost_estimate=pl.CostEstimate(
            flops=R * HW,
            transcendentals=0,
            bytes_accessed=2 * R * HW * itemsize + R * 4),
    )(d_rows, x2)

    return out2.reshape(N, C, H, W)


if __name__ == "__main__":
    key = jax.random.PRNGKey(0)
    kx, kmb = jax.random.split(key)

    N, C, H, W = 2, 4, 16, 16
    x = jax.random.normal(kx, (N, C, H, W), dtype=jnp.float32)
    minibatch = jax.random.normal(kmb, (N, C, H, W), dtype=jnp.float32)

    # Deterministic BatchNorm2d parameters (only `weight` matters for forward).
    weight = jnp.linspace(0.5, 1.5, C, dtype=jnp.float32)
    bias = jnp.linspace(-0.1, 0.1, C, dtype=jnp.float32)  # unused in forward

    out = dual_batchnorm2d_forward(x, minibatch, weight)
    out = jax.block_until_ready(out)

    # Pure-JAX reference mirroring the PyTorch semantics.
    mb_flat = jnp.transpose(minibatch, (1, 0, 2, 3)).reshape(C, -1)
    var_ref = mb_flat.var(axis=1, ddof=1)   # torch.var -> unbiased
    D_ref = weight / jnp.sqrt(var_ref + EPS)
    ref = D_ref[None, :, None, None] * x

    np.testing.assert_allclose(np.asarray(out), np.asarray(ref),
                               rtol=1e-5, atol=1e-5)
    print("KERNEL_OK")
</pallas_src>

<mosaic_0001>
module attributes {stable_mosaic.version = 11 : i64} {
  func.func @_stats_kernel(%arg0: i32, %arg1: i32, %arg2: memref<8x256xf32, #tpu.memory_space<vmem>>, %arg3: memref<8x2xf32, #tpu.memory_space<vmem>>) attributes {dimension_semantics = [#tpu.dimension_semantics<parallel>, #tpu.dimension_semantics<arbitrary>], iteration_bounds = array<i64: 1, 1>, scalar_prefetch = 0 : i64, scratch_operands = 0 : i64, tpu.core_type = #tpu.core_type<tc>, window_params = [{transform_indices = @transform_0, window_bounds = array<i64: 8, 256>}, {transform_indices = @transform_1, window_bounds = array<i64: 8, 2>}]} {
    %c0_i32 = arith.constant 0 : i32
    %0 = arith.cmpi eq, %arg1, %c0_i32 : i32
    %1 = arith.extui %0 : i1 to i32
    %c0_i32_0 = arith.constant 0 : i32
    %2 = arith.cmpi ne, %1, %c0_i32_0 : i32
    scf.if %2 {
      %cst_7 = arith.constant 0.000000e+00 : f32
      %13 = vector.broadcast %cst_7 : f32 to vector<8x2xf32>
      %c0_8 = arith.constant 0 : index
      %c0_9 = arith.constant 0 : index
      %14 = vector.load %arg3[%c0_8, %c0_9] : memref<8x2xf32, #tpu.memory_space<vmem>>, vector<8x2xf32>
      tpu.vector_store %arg3[%c0_8, %c0_9], %13 {strides = array<i32>} : memref<8x2xf32, #tpu.memory_space<vmem>>, vector<8x2xf32>,
    } else {
    }
    %c0 = arith.constant 0 : index
    %c0_1 = arith.constant 0 : index
    %3 = vector.load %arg2[%c0, %c0_1] : memref<8x256xf32, #tpu.memory_space<vmem>>, vector<8x256xf32>
    %cst = arith.constant dense<0.000000e+00> : vector<8xf32>
    %4 = vector.multi_reduction <add>, %3, %cst [1] : vector<8x256xf32> to vector<8xf32>
    %5 = vector.shape_cast %4 : vector<8xf32> to vector<8x1xf32>
    %6 = arith.mulf %3, %3 : vector<8x256xf32>
    %cst_2 = arith.constant dense<0.000000e+00> : vector<8xf32>
    %7 = vector.multi_reduction <add>, %6, %cst_2 [1] : vector<8x256xf32> to vector<8xf32>
    %8 = vector.shape_cast %7 : vector<8xf32> to vector<8x1xf32>
    %c0_3 = arith.constant 0 : index
    %c0_4 = arith.constant 0 : index
    %9 = vector.load %arg3[%c0_3, %c0_4] : memref<8x2xf32, #tpu.memory_space<vmem>>, vector<8x2xf32>
    %10 = tpu.concatenate %5, %8 in 1 : vector<8x1xf32>, vector<8x1xf32> -> vector<8x2xf32>
    %11 = arith.addf %9, %10 : vector<8x2xf32>
    %c0_5 = arith.constant 0 : index
    %c0_6 = arith.constant 0 : index
    %12 = vector.load %arg3[%c0_5, %c0_6] : memref<8x2xf32, #tpu.memory_space<vmem>>, vector<8x2xf32>
    tpu.vector_store %arg3[%c0_5, %c0_6], %11 {strides = array<i32>} : memref<8x2xf32, #tpu.memory_space<vmem>>, vector<8x2xf32>,
    return
  }
  func.func @transform_0(%arg0: i32, %arg1: i32) -> (i32, i32) {
    %c0_i32 = arith.constant 0 : i32
    return %arg0, %arg1 : i32, i32
  }
  func.func @transform_1(%arg0: i32, %arg1: i32) -> (i32, i32) {
    %c0_i32 = arith.constant 0 : i32
    %c0_i32_0 = arith.constant 0 : i32
    return %arg0, %c0_i32 : i32, i32
  }
}

module attributes {stable_mosaic.version = 11 : i64} {
  func.func @_scale_kernel(%arg0: i32, %arg1: i32, %arg2: memref<8x1xf32, #tpu.memory_space<vmem>>, %arg3: memref<8x256xf32, #tpu.memory_space<vmem>>, %arg4: memref<8x256xf32, #tpu.memory_space<vmem>>) attributes {dimension_semantics = [#tpu.dimension_semantics<parallel>, #tpu.dimension_semantics<parallel>], iteration_bounds = array<i64: 1, 1>, scalar_prefetch = 0 : i64, scratch_operands = 0 : i64, tpu.core_type = #tpu.core_type<tc>, window_params = [{transform_indices = @transform_0, window_bounds = array<i64: 8, 1>}, {transform_indices = @transform_1, window_bounds = array<i64: 8, 256>}, {transform_indices = @transform_2, window_bounds = array<i64: 8, 256>}]} {
    %c0 = arith.constant 0 : index
    %c0_0 = arith.constant 0 : index
    %0 = vector.load %arg3[%c0, %c0_0] : memref<8x256xf32, #tpu.memory_space<vmem>>, vector<8x256xf32>
    %c0_1 = arith.constant 0 : index
    %c0_2 = arith.constant 0 : index
    %1 = vector.load %arg2[%c0_1, %c0_2] : memref<8x1xf32, #tpu.memory_space<vmem>>, vector<8x1xf32>
    %2 = vector.broadcast %1 : vector<8x1xf32> to vector<8x256xf32>
    %3 = arith.mulf %0, %2 : vector<8x256xf32>
    %c0_3 = arith.constant 0 : index
    %c0_4 = arith.constant 0 : index
    %4 = vector.load %arg4[%c0_3, %c0_4] : memref<8x256xf32, #tpu.memory_space<vmem>>, vector<8x256xf32>
    tpu.vector_store %arg4[%c0_3, %c0_4], %3 {strides = array<i32>} : memref<8x256xf32, #tpu.memory_space<vmem>>, vector<8x256xf32>,
    return
  }
  func.func @transform_0(%arg0: i32, %arg1: i32) -> (i32, i32) {
    %c0_i32 = arith.constant 0 : i32
    %c0_i32_0 = arith.constant 0 : i32
    return %arg0, %c0_i32 : i32, i32
  }
  func.func @transform_1(%arg0: i32, %arg1: i32) -> (i32, i32) {
    %c0_i32 = arith.constant 0 : i32
    return %arg0, %arg1 : i32, i32
  }
  func.func @transform_2(%arg0: i32, %arg1: i32) -> (i32, i32) {
    %c0_i32 = arith.constant 0 : i32
    return %arg0, %arg1 : i32, i32
  }
}

</mosaic_0001>

<bundles_post_ra>
// kernel: tile.8
= control target key start
LH: loop header
LB: loop body
LE: loop exit
PB: predicated region body
PF: predicated region fallthrough
CT: control target
= control target key end

     0   :  { %s22_s0 = inlined_call_operand.vmem [shape: f32[4], index: 0, kind: input, shape index: {}]   ;;  %s23_s1 = inlined_call_operand.vmem [shape: f32[2,4], index: 1, kind: output, shape index: {}]  }
   0x1   :  { %v4_v0 = vld [vmem:[%s22_s0] ss:$0 sm:$0xff] }
   0x2   :  { %5 = vst [vmem:[%s23_s1] sm:$0x3] %v4_v0 }

// kernel: tile.0
= control target key start
LH: loop header
LB: loop body
LE: loop exit
PB: predicated region body
PF: predicated region fallthrough
CT: control target
= control target key end

     0   :  { %s35_s8 = smov 125   ;;  %vm8_vm0 = vcmask 7168   ;;  %s36_s11 = smov 126   ;;  %s62_s0 = inlined_call_operand.vmem [shape: f32[2,4], index: 0, kind: input, shape index: {}]   ;;  %s63_s1 = inlined_call_operand.vmem [shape: f32[8,1], index: 1, kind: output, shape index: {}]  }
   0x1   :  { %v5_v0 = vld [vmem:[%s62_s0] sm:$0x3]  ;;  %s34_s0 = smov 127  }
   0x2   :  { %6 = vst [vmem:[#allocation0] sm:$0x3] %v5_v0 }
   0x9   :  { %v10_v1 = vld [vmem:[#allocation0] sm:$0x3]  }
   0xa   :  { %v22_v2 = vld [vmem:[#allocation0] sm:$0x3]   ;;  %11 = vrot.lane.b32.xlu0 %v10_v1, %s34_s0 }
   0xb   :  { %23 = vrot.lane.b32.xlu1 %v22_v2, %s35_s8  ;;  %v7_v3 = vld [vmem:[#allocation0] sm:$0x3]  }
   0xc   :  { %v16_v4 = vld [vmem:[#allocation0] sm:$0x3]   ;;  %9 = vst.msk [vmem:[%s63_s1] ss:$4 sm:$0x3] %vm8_vm0, %v7_v3  }
   0xe   :  { %17 = vrot.lane.b32.xlu0 %v16_v4, %s36_s11 }
  0x7c   :  { %v12_v5 = vpop.permute.xlu0 %11  }
  0x7d   :  { %v24_v6 = vpop.permute.xlu1 %23   ;;  %28 = vst.msk [vmem:[%s63_s1 + $0x1] ss:$4 sm:$0x3] %vm8_vm0, %v12_v5  }
  0x7e   :  { %30 = vst.msk [vmem:[%s63_s1 + $0x3] ss:$4 sm:$0x3] %vm8_vm0, %v24_v6  }
  0x80   :  { %v18_v7 = vpop.permute.xlu0 %17  }
  0x81   :  { %29 = vst.msk [vmem:[%s63_s1 + $0x2] ss:$4 sm:$0x3] %vm8_vm0, %v18_v7  }

// kernel: dual_batchnorm2d_forward.2
= control target key start
LH: loop header
LB: loop body
LE: loop exit
PB: predicated region body
PF: predicated region fallthrough
CT: control target
= control target key end

     0   :  { %vm12_vm0 = vcmask 15360   ;;  %v35_v6 = vmov 0.0   ;;  %vm25_vm1 = vcmask 7168   ;;  %s61_s0 = inlined_call_operand.vmem [shape: f32[8,256], index: 0, kind: input, shape index: {}]   ;;  %s62_s1 = inlined_call_operand.vmem [shape: f32[8,2], index: 1, kind: output, shape index: {}]  }
   0x1   :  { %v14_v0 = vld [vmem:[%s61_s0] sm:$0xff]  ;;  %v15_v1 = vld [vmem:[%s61_s0 + $0x8] sm:$0xff]  ;;  %13 = vst.msk [vmem:[%s62_s1] sm:$0xff] %vm12_vm0, %v35_v6 }
   0x2   :  { %v16_v2 = vadd.f32 %v15_v1, %v14_v0  ;;  %v19_v3 = vmul.f32 %v14_v0, %v14_v0  ;;  %v20_v4 = vmul.f32 %v15_v1, %v15_v1 }
   0x4   :  { %17 = vadd.xlane.f32.xlu0 %v16_v2  ;;  %v21_v5 = vadd.f32 %v20_v4, %v19_v3 }
   0x8   :  { %22 = vadd.xlane.f32.xlu0 %v21_v5  ;;  %v24_v8 = vld [vmem:[%s62_s1] sm:$0xff] }
  0x8d   :  { %v18_v7 = vpop.xlane.xlu0 %17 }
  0x91   :  { %v23_v9 = vpop.xlane.xlu0 %22 }
  0x92   :  { %v26_v10 = vsel %vm25_vm1, %v18_v7, %v23_v9 }
  0x93   :  { %v27_v11 = vadd.f32 %v26_v10, %v24_v8 }
  0x95   :  { %29 = vst.msk [vmem:[%s62_s1] sm:$0xff] %vm12_vm0, %v27_v11 }

// kernel: dual_batchnorm2d_forward.3
= control target key start
LH: loop header
LB: loop body
LE: loop exit
PB: predicated region body
PF: predicated region fallthrough
CT: control target
= control target key end

     0   :  { %v29_v0 = vmov 0   ;;  %s60_s0 = inlined_call_operand.vmem [shape: f32[8,1], index: 0, kind: input, shape index: {}]   ;;  %s61_s1 = inlined_call_operand.vmem [shape: f32[8,256], index: 1, kind: input, shape index: {}]   ;;  %s62_s2 = inlined_call_operand.vmem [shape: f32[8,256], index: 2, kind: output, shape index: {}]  }
   0x1   :  { %28 = vset.pattern.permute.xlu0 %v29_v0  ;;  %v13_v1 = vld [vmem:[%s60_s0] sm:$0xff]  ;;  %v12_v3 = vld [vmem:[%s61_s1 + $0x8] sm:$0xff] }
   0x2   :  { %16 = vperm.xlu0 %28, %v13_v1   ;;  %v11_v2 = vld [vmem:[%s61_s1] sm:$0xff] }
  0x7d   :  { %v17_v4 = vpop.permute.xlu0 %16 }
  0x7e   :  { %v19_v5 = vmul.f32 %v17_v4, %v11_v2  ;;  %v20_v6 = vmul.f32 %v17_v4, %v12_v3 }
  0x80   :  { %21 = vst [vmem:[%s62_s2] sm:$0xff] %v19_v5  ;;  %22 = vst [vmem:[%s62_s2 + $0x8] sm:$0xff] %v20_v6 }

</bundles_post_ra>
